<compile_context>
chip_gen: v7x
topology: tpu7x:2x2x1
jax: 0.10.0
libtpu: 0.0.40
codegen_flags: <defaults>
</compile_context>

<pallas_src>
import functools

import jax
import jax.numpy as jnp
from jax import lax
from jax.experimental import pallas as pl
from jax.experimental.pallas import tpu as pltpu

# MXU operand dtype (native on v5e/v6e/v7x). Accumulation / bias / ReLU stay float32.
MATMUL_DTYPE = jnp.bfloat16


# ---------------------------------------------------------------------------
# Fused kernel: conv (one whole-tile matmul) + ReLU + fc (one batched contraction)
# + ReLU + merged value/pi heads. Whole batch in a single invocation (no grid).
# ---------------------------------------------------------------------------
def _fused_forward_kernel(patches_ref,   # VMEM [CKK, B*HW]     bf16  im2col taps (b-major cols)
                          wconv_ref,     # VMEM [Cout, CKK]     bf16  conv weight (PyTorch flatten)
                          bconv_ref,     # VMEM [Cout, 1]       f32   conv bias column
                          wfc_ref,       # VMEM [Cout, HID, HW] bf16  fc weight, lane-dense over HW
                          bfc_ref,       # VMEM [1, HID]        f32
                          whead_ref,     # VMEM [NH, HID]       bf16  concat(value, pi) weights (trans-B)
                          bhead_ref,     # VMEM [1, NH]         f32
                          out_ref,       # VMEM [B, NH]         f32
                          act_ref,       # VMEM scratch [Cout, B, HW] f32
                          *, batch, hw, matmul_dtype):
    # ---- conv as ONE whole-tile matmul: [Cout, CKK] @ [CKK, B*HW] -> [Cout, B*HW]
    conv = jnp.dot(wconv_ref[...], patches_ref[...],
                   preferred_element_type=jnp.float32)
    conv = jnp.maximum(conv + bconv_ref[...], 0.0)            # column-bias broadcast + ReLU (f32)

    # ---- relayout [Cout, B*HW] -> [Cout, B, HW] via VMEM scratch (aligned lane-slice
    #      stores; avoids an in-register lane->sublane reshape).
    for bb in range(batch):                                    # static unroll, B is tiny
        act_ref[:, bb, :] = conv[:, bb * hw:(bb + 1) * hw]
    act3 = act_ref[...].astype(matmul_dtype)                   # [Cout, B, HW]

    # ---- fc as ONE batched contraction over the lane-dense HW axis
    #      (einsum 'cbs,chs->cbh': batch=Cout, M=B, K=HW, N=HID)
    hc = lax.dot_general(act3, wfc_ref[...],
                         dimension_numbers=(((2,), (2,)), ((0,), (0,))),
                         preferred_element_type=jnp.float32)   # [Cout, B, HID]
    h = jnp.maximum(jnp.sum(hc, axis=0) + bfc_ref[...], 0.0)   # fc bias + ReLU   [B, HID] f32

    # ---- merged value / pi heads: one trans-B dot; lane 0 = value, lanes 1.. = pi logits
    out = lax.dot_general(h.astype(matmul_dtype), whead_ref[...],
                          dimension_numbers=(((1,), (1,)), ((), ())),
                          preferred_element_type=jnp.float32)  # [B, NH]
    out_ref[...] = out + bhead_ref[...]


# ---------------------------------------------------------------------------
# Wrapper
# ---------------------------------------------------------------------------
@jax.jit
def actor_critic_forward(x, params):
    """x: [B, Cin, H, W] float32 in [0, 1] (NCHW, same as the PyTorch module)."""
    B, Cin, H, W = x.shape
    K = 3
    w_conv = params["w_conv"]                      # [Cout, Cin, K, K]
    b_conv = params["b_conv"]                      # [Cout]
    Cout = w_conv.shape[0]
    w_fc, b_fc = params["w_fc"], params["b_fc"]    # [Cout*H*W, HID], [HID]
    w_v, b_v = params["w_v"], params["b_v"]        # [HID, 1], [1]
    w_pi, b_pi = params["w_pi"], params["b_pi"]    # [HID, N_ACT], [N_ACT]
    HID = w_fc.shape[1]
    N_ACT = w_pi.shape[1]
    HW = H * W
    CKK = Cin * K * K
    NH = 1 + N_ACT

    # ---- im2col glue (one XLA fusion). patches[ci*K*K + kh*K + kw, b*HW + h*W + w]:
    #      tap order matches PyTorch's [Cout, Cin, kh, kw] weight flattening; columns
    #      are b-major so the in-kernel batch split lands on aligned 256-lane slices.
    xpad = jnp.pad(x, ((0, 0), (0, 0), (1, 1), (1, 1)))        # [B, Cin, H+2, W+2]
    taps = [xpad[:, :, kh:kh + H, kw:kw + W] for kh in range(K) for kw in range(K)]
    pt = jnp.stack(taps, axis=2)                               # [B, Cin, K*K, H, W]
    patches = pt.transpose(1, 2, 0, 3, 4).reshape(CKK, B * HW).astype(MATMUL_DTYPE)

    # ---- weight re-layouts + bf16 casts (done ONCE in the wrapper, not in-kernel)
    w_conv_mat = w_conv.reshape(Cout, CKK).astype(MATMUL_DTYPE)            # [Cout, CKK]
    b_conv_col = b_conv.reshape(Cout, 1).astype(jnp.float32)               # [Cout, 1]
    w_fc_t = (w_fc.reshape(Cout, HW, HID).transpose(0, 2, 1)               # [Cout, HID, HW]
              .astype(MATMUL_DTYPE))                                       # lane-dense (HW last)
    b_fc_row = b_fc.reshape(1, HID).astype(jnp.float32)
    w_head_t = jnp.concatenate([w_v, w_pi], axis=1).T.astype(MATMUL_DTYPE)  # [NH, HID]
    b_head_row = jnp.concatenate([b_v, b_pi]).reshape(1, NH).astype(jnp.float32)

    kernel = functools.partial(_fused_forward_kernel, batch=B, hw=HW,
                               matmul_dtype=MATMUL_DTYPE)

    vmem = pl.BlockSpec(memory_space=pltpu.MemorySpace.VMEM)
    out = pl.pallas_call(
        kernel,
        out_shape=jax.ShapeDtypeStruct((B, NH), jnp.float32),
        in_specs=[vmem, vmem, vmem, vmem, vmem, vmem, vmem],
        out_specs=vmem,
        scratch_shapes=[pltpu.VMEM((Cout, B, HW), jnp.float32)],
    )(patches, w_conv_mat, b_conv_col, w_fc_t, b_fc_row, w_head_t, b_head_row)

    return out[:, 0], out[:, 1:]                               # ([B], [B, N_ACT])


# ---------------------------------------------------------------------------
# Parameters (weight_norm g*v/||v|| folded in at setup; forward == plain Linear)
# and a pure-JAX f32 reference for the correctness check.
# ---------------------------------------------------------------------------
def make_params(key, cin=4, cout=8, h=16, w=16, hid=32, n_act=6, k=3):
    ks = jax.random.split(key, 8)
    scale = 0.05
    w_conv = scale * jax.random.normal(ks[0], (cout, cin, k, k), jnp.float32)
    b_conv = scale * jax.random.normal(ks[1], (cout,), jnp.float32)
    v_fc = scale * jax.random.normal(ks[2], (cout * h * w, hid), jnp.float32)
    g_fc = 1.0 + 0.01 * jax.random.normal(ks[3], (hid,), jnp.float32)
    w_fc = v_fc * (g_fc / jnp.linalg.norm(v_fc, axis=0))[None, :]
    b_fc = scale * jax.random.normal(ks[4], (hid,), jnp.float32)
    w_v = scale * jax.random.normal(ks[5], (hid, 1), jnp.float32)
    b_v = jnp.zeros((1,), jnp.float32)
    w_pi = scale * jax.random.normal(ks[6], (hid, n_act), jnp.float32)
    b_pi = scale * jax.random.normal(ks[7], (n_act,), jnp.float32)
    return dict(w_conv=w_conv, b_conv=b_conv, w_fc=w_fc, b_fc=b_fc,
                w_v=w_v, b_v=b_v, w_pi=w_pi, b_pi=b_pi)


def _reference_forward(x, params):
    conv = jax.lax.conv_general_dilated(
        x, params["w_conv"], window_strides=(1, 1), padding=((1, 1), (1, 1)),
        dimension_numbers=("NCHW", "OIHW", "NCHW"))
    conv = jnp.maximum(conv + params["b_conv"][None, :, None, None], 0.0)
    feat = conv.reshape(x.shape[0], -1)
    h = jnp.maximum(feat @ params["w_fc"] + params["b_fc"], 0.0)
    val = (h @ params["w_v"] + params["b_v"])[:, 0]
    pi = h @ params["w_pi"] + params["b_pi"]
    return val, pi


if __name__ == "__main__":
    key = jax.random.PRNGKey(0)
    k_x, k_p = jax.random.split(key)

    B, Cin, H, W = 2, 4, 16, 16
    x = jax.random.uniform(k_x, (B, Cin, H, W), jnp.float32, minval=0.0, maxval=1.0)
    params = make_params(k_p, cin=Cin, cout=8, h=H, w=W, hid=32, n_act=6)

    # mirrors the PyTorch `assert x.data.max() <= 1.0`
    assert float(jnp.max(x)) <= 1.0

    val, pi_logit = actor_critic_forward(x, params)
    jax.block_until_ready((val, pi_logit))

    assert val.shape == (B,), val.shape
    assert pi_logit.shape == (B, 6), pi_logit.shape

    val_ref, pi_ref = _reference_forward(x, params)
    # bf16 MXU operands with f32 accumulation: tolerance loosened vs the f32 reference
    # (expected error ~1e-3 at these magnitudes; 2e-2 gives ample headroom).
    assert jnp.allclose(val, val_ref, atol=2e-2, rtol=2e-2)
    assert jnp.allclose(pi_logit, pi_ref, atol=2e-2, rtol=2e-2)

    print("KERNEL_OK")
</pallas_src>

<mosaic_0001>
module attributes {stable_mosaic.version = 11 : i64} {
  func.func @_fused_forward_kernel(%arg0: memref<36x512xbf16, #tpu.memory_space<vmem>>, %arg1: memref<8x36xbf16, #tpu.memory_space<vmem>>, %arg2: memref<8x1xf32, #tpu.memory_space<vmem>>, %arg3: memref<8x32x256xbf16, #tpu.memory_space<vmem>>, %arg4: memref<1x32xf32, #tpu.memory_space<vmem>>, %arg5: memref<7x32xbf16, #tpu.memory_space<vmem>>, %arg6: memref<1x7xf32, #tpu.memory_space<vmem>>, %arg7: memref<2x7xf32, #tpu.memory_space<vmem>>, %arg8: memref<8x2x256xf32, #tpu.memory_space<vmem>>) attributes {dimension_semantics = [], scalar_prefetch = 0 : i64, scratch_operands = 1 : i64, tpu.core_type = #tpu.core_type<tc>} {
    %c0 = arith.constant 0 : index
    %c0_0 = arith.constant 0 : index
    %0 = vector.load %arg1[%c0, %c0_0] : memref<8x36xbf16, #tpu.memory_space<vmem>>, vector<8x36xbf16>
    %c0_1 = arith.constant 0 : index
    %c0_2 = arith.constant 0 : index
    %1 = vector.load %arg0[%c0_1, %c0_2] : memref<36x512xbf16, #tpu.memory_space<vmem>>, vector<36x512xbf16>
    %cst = arith.constant dense<0.000000e+00> : vector<8x512xf32>
    %2 = tpu.matmul %0, %1, %cst {dimension_numbers = #tpu.dot_dimension_numbers<[1], [0], [0], [1], [0, 0, 1, 1], [], []>} : vector<8x36xbf16>, vector<36x512xbf16>, vector<8x512xf32> -> vector<8x512xf32>
    %c0_3 = arith.constant 0 : index
    %c0_4 = arith.constant 0 : index
    %3 = vector.load %arg2[%c0_3, %c0_4] : memref<8x1xf32, #tpu.memory_space<vmem>>, vector<8x1xf32>
    %4 = vector.broadcast %3 : vector<8x1xf32> to vector<8x512xf32>
    %5 = arith.addf %2, %4 : vector<8x512xf32>
    %cst_5 = arith.constant 0.000000e+00 : f32
    %6 = vector.broadcast %cst_5 : f32 to vector<8x512xf32>
    %7 = arith.maximumf %5, %6 : vector<8x512xf32>
    %8 = vector.extract_strided_slice %7 {offsets = [0, 0], sizes = [8, 256], strides = [1, 1]} : vector<8x512xf32> to vector<8x256xf32>
    %c0_6 = arith.constant 0 : index
    %c0_7 = arith.constant 0 : index
    %c0_8 = arith.constant 0 : index
    %9 = vector.load %arg8[%c0_6, %c0_7, %c0_8] : memref<8x2x256xf32, #tpu.memory_space<vmem>>, vector<8x1x256xf32>
    %10 = vector.shape_cast %9 : vector<8x1x256xf32> to vector<8x256xf32>
    %11 = vector.shape_cast %8 : vector<8x256xf32> to vector<8x1x256xf32>
    tpu.vector_store %arg8[%c0_6, %c0_7, %c0_8], %11 {strides = array<i32>} : memref<8x2x256xf32, #tpu.memory_space<vmem>>, vector<8x1x256xf32>,
    %12 = vector.extract_strided_slice %7 {offsets = [0, 256], sizes = [8, 256], strides = [1, 1]} : vector<8x512xf32> to vector<8x256xf32>
    %c0_9 = arith.constant 0 : index
    %c1 = arith.constant 1 : index
    %c0_10 = arith.constant 0 : index
    %13 = vector.load %arg8[%c0_9, %c1, %c0_10] : memref<8x2x256xf32, #tpu.memory_space<vmem>>, vector<8x1x256xf32>
    %14 = vector.shape_cast %13 : vector<8x1x256xf32> to vector<8x256xf32>
    %15 = vector.shape_cast %12 : vector<8x256xf32> to vector<8x1x256xf32>
    tpu.vector_store %arg8[%c0_9, %c1, %c0_10], %15 {strides = array<i32>} : memref<8x2x256xf32, #tpu.memory_space<vmem>>, vector<8x1x256xf32>,
    %c0_11 = arith.constant 0 : index
    %c0_12 = arith.constant 0 : index
    %c0_13 = arith.constant 0 : index
    %16 = vector.load %arg8[%c0_11, %c0_12, %c0_13] : memref<8x2x256xf32, #tpu.memory_space<vmem>>, vector<8x2x256xf32>
    %17 = arith.truncf %16 : vector<8x2x256xf32> to vector<8x2x256xbf16>
    %c0_14 = arith.constant 0 : index
    %c0_15 = arith.constant 0 : index
    %c0_16 = arith.constant 0 : index
    %18 = vector.load %arg3[%c0_14, %c0_15, %c0_16] : memref<8x32x256xbf16, #tpu.memory_space<vmem>>, vector<8x32x256xbf16>
    %cst_17 = arith.constant dense<0.000000e+00> : vector<8x2x32xf32>
    %19 = tpu.matmul %17, %18, %cst_17 {dimension_numbers = #tpu.dot_dimension_numbers<[2], [2], [1], [1], [0, 0, 0, 1, 1, 1], [0], [0]>} : vector<8x2x256xbf16>, vector<8x32x256xbf16>, vector<8x2x32xf32> -> vector<8x2x32xf32>
    %cst_18 = arith.constant dense<0.000000e+00> : vector<2x32xf32>
    %20 = vector.multi_reduction <add>, %19, %cst_18 [0] : vector<8x2x32xf32> to vector<2x32xf32>
    %c0_19 = arith.constant 0 : index
    %c0_20 = arith.constant 0 : index
    %21 = vector.load %arg4[%c0_19, %c0_20] : memref<1x32xf32, #tpu.memory_space<vmem>>, vector<1x32xf32>
    %22 = vector.broadcast %21 : vector<1x32xf32> to vector<2x32xf32>
    %23 = arith.addf %20, %22 : vector<2x32xf32>
    %cst_21 = arith.constant 0.000000e+00 : f32
    %24 = vector.broadcast %cst_21 : f32 to vector<2x32xf32>
    %25 = arith.maximumf %23, %24 : vector<2x32xf32>
    %26 = arith.truncf %25 : vector<2x32xf32> to vector<2x32xbf16>
    %c0_22 = arith.constant 0 : index
    %c0_23 = arith.constant 0 : index
    %27 = vector.load %arg5[%c0_22, %c0_23] : memref<7x32xbf16, #tpu.memory_space<vmem>>, vector<7x32xbf16>
    %cst_24 = arith.constant dense<0.000000e+00> : vector<2x7xf32>
    %28 = tpu.matmul %26, %27, %cst_24 {dimension_numbers = #tpu.dot_dimension_numbers<[1], [1], [0], [0], [0, 0, 1, 0], [], []>} : vector<2x32xbf16>, vector<7x32xbf16>, vector<2x7xf32> -> vector<2x7xf32>
    %c0_25 = arith.constant 0 : index
    %c0_26 = arith.constant 0 : index
    %29 = vector.load %arg6[%c0_25, %c0_26] : memref<1x7xf32, #tpu.memory_space<vmem>>, vector<1x7xf32>
    %30 = vector.broadcast %29 : vector<1x7xf32> to vector<2x7xf32>
    %31 = arith.addf %28, %30 : vector<2x7xf32>
    %c0_27 = arith.constant 0 : index
    %c0_28 = arith.constant 0 : index
    %32 = vector.load %arg7[%c0_27, %c0_28] : memref<2x7xf32, #tpu.memory_space<vmem>>, vector<2x7xf32>
    tpu.vector_store %arg7[%c0_27, %c0_28], %31 {strides = array<i32>} : memref<2x7xf32, #tpu.memory_space<vmem>>, vector<2x7xf32>,
    return
  }
}

</mosaic_0001>

<bundles_post_ra>
// kernel: actor_critic_forward.1
= control target key start
LH: loop header
LB: loop body
LE: loop exit
PB: predicated region body
PF: predicated region fallthrough
CT: control target
= control target key end

     0   :  { %v1199_v1 = vmov 0   ;;  %vm98_vm0 = vcmask 1041408   ;;  %vm94_vm1 = vcmask 293888   ;;  %v1200_v29 = vmov 1966171168   ;;  %s1437_s0 = inlined_call_operand.vmem [shape: bf16[36,512], index: 0, kind: input, shape index: {}]   ;;  %s1438_s2 = inlined_call_operand.vmem [shape: f32[8,1], index: 2, kind: input, shape index: {}]   ;;  %s1439_s1 = inlined_call_operand.vmem [shape: bf16[8,36], index: 1, kind: input, shape index: {}]   ;;  %s1440_s3 = inlined_call_operand.vmem [shape: bf16[8,32,256], index: 3, kind: input, shape index: {}]   ;;  %s1441_s5 = inlined_call_operand.vmem [shape: bf16[7,32], index: 5, kind: input, shape index: {}]   ;;  %s1442_s4 = inlined_call_operand.vmem [shape: f32[1,32], index: 4, kind: input, shape index: {}]   ;;  %s1443_s6 = inlined_call_operand.vmem [shape: f32[1,7], index: 6, kind: input, shape index: {}]   ;;  %s1444_s7 = inlined_call_operand.vmem [shape: f32[2,7], index: 7, kind: output, shape index: {}]  }
   0x1   :  { %v1135_v0 = vld [vmem:[%s1437_s0 + $0x4] ss:$16 sps:$4 sm:$0xff]   ;;  %143 = vmatprep.mubr.bf16.mxu0 %v1199_v1  ;;  %184 = vmatprep.mubr.bf16.mxu1 %v1199_v1  ;;  %v1137_v2 = vld [vmem:[%s1437_s0 + $0xc] ss:$16 sps:$4 sm:$0xff]   ;;  %v1139_v3 = vld [vmem:[%s1437_s0] ss:$16 sps:$4 sm:$0xff]   ;;  %v202_v30 = vunpack.c.l.s4 %v1200_v29  ;;  %v204_v31 = vlaneseq }
   0x2   :  { %1134 = vset.pattern.permute.xlu0 %v1199_v1  ;;  %111 = vmatprep.subr.bf16.mxu0 %v1135_v0  ;;  %v1140_v4 = vld [vmem:[%s1437_s0 + $0x8] ss:$16 sps:$4 sm:$0xff]   ;;  %v1141_v5 = vld [vmem:[%s1437_s0 + $0x24] ss:$16 sps:$4 sm:$0xff]   ;;  %v1143_v6 = vld [vmem:[%s1437_s0 + $0x2c] ss:$16 sps:$4 sm:$0xff]  }
   0x3   :  { %152 = vmatprep.subr.bf16.mxu1 %v1137_v2  ;;  %112 = vmatpush1.bf16.msra.mxu0 %v1139_v3  ;;  %v1145_v7 = vld [vmem:[%s1437_s0 + $0x20] ss:$16 sps:$4 sm:$0xff]   ;;  %v1146_v8 = vld [vmem:[%s1437_s0 + $0x28] ss:$16 sps:$4 sm:$0xff]   ;;  %v1153_v19 = vld [vmem:[%s1440_s3 + $0x4] ss:$8 sps:$4 sm:$0xff]   ;;  %v203_v35 = vunpack.c.0.s8 %v202_v30 }
   0x4   :  { %153 = vmatpush1.bf16.msra.mxu1 %v1140_v4  ;;  %113 = vmatprep.subr.bf16.mxu0 %v1141_v5  ;;  %v36_v9 = vld [vmem:[%s1437_s0 + $0x40] sm:$0x33]  ;;  %v37_v10 = vld [vmem:[%s1437_s0 + $0x48] sm:$0x33]  ;;  %v1159_v23 = vld [vmem:[%s1440_s3 + $0x14] ss:$8 sps:$4 sm:$0xff]  }
   0x5   :  { %154 = vmatprep.subr.bf16.mxu1 %v1143_v6  ;;  %v1072_v11 = vcombine.high %v36_v9, %v36_v9  ;;  %v1074_v12 = vcombine.high %v37_v10, %v37_v10  ;;  %v1071_v13 = vcombine.low %v36_v9, %v36_v9  ;;  %v1073_v14 = vcombine.low %v37_v10, %v37_v10  ;;  %v38_v15 = vld [vmem:[%s1438_s2] sm:$0xff]  ;;  %v1157_v24 = vld [vmem:[%s1440_s3 + $0x10] ss:$8 sps:$4 sm:$0xff]   ;;  %v1162_v26 = vld [vmem:[%s1440_s3 + $0x34] ss:$8 sps:$4 sm:$0xff]  }
   0x6   :  { %41 = vperm.xlu0 %1134, %v38_v15   ;;  %v27_v18 = vld [vmem:[%s1439_s1] sm:$0xf]  ;;  %v1156_v21 = vld [vmem:[%s1440_s3 + $0x24] ss:$8 sps:$4 sm:$0xff]   ;;  %v1160_v25 = vld [vmem:[%s1440_s3 + $0x30] ss:$8 sps:$4 sm:$0xff]  }
   0x7   :  { %114 = vmatpush1.bf16.msra.mxu0 %v1145_v7  ;;  %v100_v16 = vsel %vm98_vm0, %v1071_v13, 0  ;;  %v106_v17 = vsel %vm98_vm0, %v1073_v14, 0  ;;  %v1151_v20 = vld [vmem:[%s1440_s3] ss:$8 sps:$4 sm:$0xff]   ;;  %v1165_v27 = vld [vmem:[%s1440_s3 + $0x44] ss:$8 sps:$4 sm:$0xff]  }
   0x8   :  { %155 = vmatpush1.bf16.msra.mxu1 %v1146_v8  ;;  %1075 = vmatprep.subr.msk.bf16.mxu0 %vm98_vm0, %v1072_v11  ;;  %v1154_v22 = vld [vmem:[%s1440_s3 + $0x20] ss:$8 sps:$4 sm:$0xff]   ;;  %v1168_v28 = vld [vmem:[%s1440_s3 + $0x64] ss:$8 sps:$4 sm:$0xff]   ;;  %v205_v36 = vshrl.u32 %v204_v31, 7  ;;  %vm1313_vm2 = vcmp.lt.s32.totalorder %v204_v31, 256 }
   0x9   :  { %1077 = vmatprep.subr.msk.bf16.mxu1 %vm98_vm0, %v1074_v12  ;;  %vm1010_vm3 = vcmask 261120   ;;  %vm1202_vm4 = vmmov 0   ;;  %vm976_vm5 = vcmask 254976   ;;  %vm1057_vm6 = vcmask 50176  }
   0xa   :  { %v206_v50 = vsub.s32 %v203_v35, %v205_v36  ;;  %v1169_v35 = vld [vmem:[%s1440_s3 + $0x50] ss:$8 sps:$4 sm:$0xff]   ;;  %v1177_v36 = vld [vmem:[%s1440_s3 + $0x84] ss:$8 sps:$4 sm:$0xff]  }
   0xb   :  { %116 = vmatpush1.bf16.msra.mxu0 %v100_v16 }
   0xc   :  { %157 = vmatpush1.bf16.msra.mxu1 %v106_v17  ;;  %516 = vmatprep.subr.bf16.mxu0 %v1153_v19 }
   0xd   :  { %576 = vmatprep.subr.bf16.mxu1 %v1156_v21  ;;  %v1163_v21 = vld [vmem:[%s1440_s3 + $0x40] ss:$8 sps:$4 sm:$0xff]  }
   0xe   :  { %1076 = vmatmul.mubr.msk.bf16.vlgmr.msra.gmra.mrb[0].mxu0 %vm94_vm1, %v27_v18 }
   0xf   :  { %1078 = vmatmul.mubr.msk.bf16.vlgmr.msra.gmra.mrb[0].mxu1 %vm94_vm1, %v27_v18 }
  0x14   :  { %517 = vmatpush1.bf16.xpose.msra.mxu0 %v1151_v20 }
  0x15   :  { %577 = vmatpush1.bf16.xpose.msra.mxu1 %v1154_v22  ;;  %518 = vmatprep.subr.bf16.mxu0 %v1159_v23 }
  0x16   :  { %578 = vmatprep.subr.bf16.mxu1 %v1162_v26 }
  0x1c   :  { %519 = vmatpush1.bf16.xpose.msra.mxu0 %v1157_v24 }
  0x1d   :  { %579 = vmatpush1.bf16.xpose.msra.mxu1 %v1160_v25  ;;  %636 = vmatprep.subr.bf16.mxu0 %v1165_v27 }
  0x1e   :  { %696 = vmatprep.subr.bf16.mxu1 %v1168_v28  ;;  %v1166_v28 = vld [vmem:[%s1440_s3 + $0x60] ss:$8 sps:$4 sm:$0xff]  }
  0x85   :  { %v42_v32 = vpop.permute.xlu0 %41 }
  0xe1   :  { %v145_v33 = vpop.f32.mrb[0].mxu0 }
  0xe2   :  { %v186_v34 = vpop.f32.mrb[0].mxu1  ;;  %v146_v37 = vadd.f32 %v145_v33, %v42_v32  ;;  %v147_v39 = vpop.f32.mrb[1].mxu0  ;;  %v1174_v33 = vld [vmem:[%s1440_s3 + $0x74] ss:$8 sps:$4 sm:$0xff]  }
  0xe3   :  { %v187_v38 = vadd.f32 %v186_v34, %v42_v32  ;;  %v188_v40 = vpop.f32.mrb[1].mxu1  ;;  %v148_v41 = vadd.f32 %v147_v39, %v42_v32  ;;  %v149_v43 = vpop.f32.mrb[2].mxu0  ;;  %v1180_v39 = vld [vmem:[%s1440_s3 + $0xa4] ss:$8 sps:$4 sm:$0xff]  }
  0xe4   :  { %v189_v42 = vadd.f32 %v188_v40, %v42_v32  ;;  %v190_v44 = vpop.f32.mrb[2].mxu1  ;;  %v193_v45 = vmax.f32 %v146_v37, 0.0  ;;  %v150_v47 = vpop.f32.mrb[3].mxu0  ;;  %v1171_v32 = vld [vmem:[%s1440_s3 + $0x54] ss:$8 sps:$4 sm:$0xff]  }
  0xe5   :  { %v195_v46 = vmax.f32 %v187_v38, 0.0  ;;  %v191_v48 = vpop.f32.mrb[3].mxu1  ;;  %v194_v49 = vmax.f32 %v148_v41, 0.0  ;;  %v1172_v37 = vld [vmem:[%s1440_s3 + $0x70] ss:$8 sps:$4 sm:$0xff]  }
  0xe6   :  { %v196_v51 = vmax.f32 %v189_v42, 0.0  ;;  %v1175_v42 = vld [vmem:[%s1440_s3 + $0x80] ss:$8 sps:$4 sm:$0xff]  }
  0xe7   :  { %v199_v52 = vcombine.low %v193_v45, %v194_v49  ;;  %v200_v53 = vcombine.high %v193_v45, %v194_v49  ;;  %v1183_v45 = vld [vmem:[%s1440_s3 + $0x94] ss:$8 sps:$4 sm:$0xff]   ;;  %v1178_v47 = vld [vmem:[%s1440_s3 + $0xa0] ss:$8 sps:$4 sm:$0xff]  }
  0xe8   :  { %v278_v54 = vcombine.low %v195_v46, %v196_v51  ;;  %v279_v55 = vcombine.high %v195_v46, %v196_v51  ;;  %v1186_v49 = vld [vmem:[%s1440_s3 + $0xb4] ss:$8 sps:$4 sm:$0xff]   ;;  %v1181_v51 = vld [vmem:[%s1440_s3 + $0x90] ss:$8 sps:$4 sm:$0xff]  }
  0xe9   :  { %v207_v56 = vrot.slane %v199_v52, %v206_v50  ;;  %v214_v57 = vrot.slane %v200_v53, %v206_v50  ;;  %v1189_v52 = vld [vmem:[%s1440_s3 + $0xc4] ss:$8 sps:$4 sm:$0xff]   ;;  %v1184_v53 = vld [vmem:[%s1440_s3 + $0xb0] ss:$8 sps:$4 sm:$0xff]  }
  0xea   :  { %v286_v58 = vrot.slane %v278_v54, %v206_v50  ;;  %v293_v59 = vrot.slane %v279_v55, %v206_v50  ;;  %v1192_v55 = vld [vmem:[%s1440_s3 + $0xe4] ss:$8 sps:$4 sm:$0xff]  }
  0xeb   :  { %v215_v61 = vcombine.high %v207_v56, %v207_v56  ;;  %v216_v62 = vcombine.high %v214_v57, %v214_v57  ;;  %v223_v63 = vrot.slane %v207_v56, %v206_v50  ;;  %v230_v0 = vrot.slane %v214_v57, %v206_v50 }
  0xec   :  { %v294_v1 = vcombine.high %v286_v58, %v286_v58  ;;  %v295_v2 = vcombine.high %v293_v59, %v293_v59  ;;  %v302_v3 = vrot.slane %v286_v58, %v206_v50  ;;  %v309_v4 = vrot.slane %v293_v59, %v206_v50  ;;  %v1187_v58 = vld [vmem:[%s1440_s3 + $0xc0] ss:$8 sps:$4 sm:$0xff]  }
  0xed   :  { %v237_v5 = vrot.slane %v215_v61, %v206_v50  ;;  %v244_v6 = vrot.slane %v216_v62, %v206_v50  ;;  %v245_v7 = vcombine.high %v223_v63, %v223_v63  ;;  %v246_v8 = vcombine.high %v230_v0, %v230_v0  ;;  %261 = vst.msk [vmem:[#allocation2] ss:$2 sm:$0x3] %vm1313_vm2, %v223_v63  ;;  %v1195_v61 = vld [vmem:[%s1440_s3 + $0xd4] ss:$8 sps:$4 sm:$0xff]  }
  0xee   :  { %269 = vst.msk [vmem:[#allocation2 + $0x10] ss:$2 sm:$0x3] %vm1313_vm2, %v230_v0  ;;  %v316_v9 = vrot.slane %v294_v1, %v206_v50  ;;  %v323_v10 = vrot.slane %v295_v2, %v206_v50  ;;  %v324_v11 = vcombine.high %v302_v3, %v302_v3  ;;  %v325_v12 = vcombine.high %v309_v4, %v309_v4  ;;  %v1190_v63 = vld [vmem:[%s1440_s3 + $0xe0] ss:$8 sps:$4 sm:$0xff]  }
  0xef   :  { %337 = vst.msk [vmem:[#allocation2 + $0x1] ss:$2 sm:$0x3] %vm1313_vm2, %v302_v3  ;;  %345 = vst.msk [vmem:[#allocation2 + $0x11] ss:$2 sm:$0x3] %vm1313_vm2, %v309_v4  ;;  %v247_v13 = vcombine.high %v237_v5, %v237_v5  ;;  %v248_v14 = vcombine.high %v244_v6, %v244_v6 }
  0xf0   :  { %263 = vst.msk [vmem:[#allocation2 + $0x4] ss:$2 sm:$0x3] %vm1313_vm2, %v237_v5  ;;  %265 = vst.msk [vmem:[#allocation2 + $0x8] ss:$2 sm:$0x3] %vm1313_vm2, %v245_v7  ;;  %v326_v15 = vcombine.high %v316_v9, %v316_v9  ;;  %v327_v16 = vcombine.high %v323_v10, %v323_v10 }
  0xf1   :  { %271 = vst.msk [vmem:[#allocation2 + $0x14] ss:$2 sm:$0x3] %vm1313_vm2, %v244_v6  ;;  %273 = vst.msk [vmem:[#allocation2 + $0x18] ss:$2 sm:$0x3] %vm1313_vm2, %v246_v8 }
  0xf2   :  { %339 = vst.msk [vmem:[#allocation2 + $0x5] ss:$2 sm:$0x3] %vm1313_vm2, %v316_v9  ;;  %341 = vst.msk [vmem:[#allocation2 + $0x9] ss:$2 sm:$0x3] %vm1313_vm2, %v324_v11 }
  0xf3   :  { %347 = vst.msk [vmem:[#allocation2 + $0x15] ss:$2 sm:$0x3] %vm1313_vm2, %v323_v10  ;;  %349 = vst.msk [vmem:[#allocation2 + $0x19] ss:$2 sm:$0x3] %vm1313_vm2, %v325_v12 }
  0xf4   :  { %267 = vst.msk [vmem:[#allocation2 + $0xc] ss:$2 sm:$0x3] %vm1313_vm2, %v247_v13  ;;  %275 = vst.msk [vmem:[#allocation2 + $0x1c] ss:$2 sm:$0x3] %vm1313_vm2, %v248_v14 }
  0xf5   :  { %343 = vst.msk [vmem:[#allocation2 + $0xd] ss:$2 sm:$0x3] %vm1313_vm2, %v326_v15  ;;  %351 = vst.msk [vmem:[#allocation2 + $0x1d] ss:$2 sm:$0x3] %vm1313_vm2, %v327_v16 }
  0xf6   :  { %v1079_v17 = vld.sshfl [vmem:[#allocation2] sm:$0x33 pattern:$0x76325410]  ;;  %v1198_v1 = vld [vmem:[%s1440_s3 + $0xf4] ss:$8 sps:$4 sm:$0xff]  }
  0xf7   :  { %v375_v18 = vcombine.high %v1079_v17, %v1079_v17  ;;  %v448_v24 = vpack.c.bf16 %v1079_v17, %v1079_v17  ;;  %v1083_v38 = vld.sshfl [vmem:[#allocation2 + $0x10] sm:$0x33 pattern:$0x76325410]  ;;  %v1002_v7 = vld [vmem:[%s1441_s5] sm:$0xf] }
  0xf8   :  { %v407_v41 = vcombine.high %v1083_v38, %v1083_v38  ;;  %v456_v60 = vpack.c.bf16 %v1083_v38, %v1083_v38  ;;  %v1193_v3 = vld [vmem:[%s1440_s3 + $0xd0] ss:$8 sps:$4 sm:$0xff]   ;;  %v1201_v8 = vmov 0.0   ;;  %v1015_v9 = vsel %vm1010_vm3, %v1002_v7, 0 }
  0xf9   :  { %v1080_v19 = vld.sshfl [vmem:[#allocation2 + $0x4] sm:$0x33 pattern:$0x76325410]  ;;  %v449_v20 = vpack.c.bf16 %v375_v18, %v375_v18  ;;  %v1196_v4 = vld [vmem:[%s1440_s3 + $0xf0] ss:$8 sps:$4 sm:$0xff]  }
  0xfa   :  { %v383_v22 = vcombine.high %v1080_v19, %v1080_v19  ;;  %v1081_v23 = vld.sshfl [vmem:[#allocation2 + $0x8] sm:$0x33 pattern:$0x76325410]  ;;  %v450_v30 = vpack.c.bf16 %v1080_v19, %v1080_v19  ;;  %v457_v46 = vpack.c.bf16 %v407_v41, %v407_v41 }
  0xfb   :  { %v391_v25 = vcombine.high %v1081_v23, %v1081_v23  ;;  %548 = vmatprep.mubr.bf16.mxu0 %v449_v20  ;;  %v1084_v40 = vld.sshfl [vmem:[#allocation2 + $0x14] sm:$0x33 pattern:$0x76325410]  ;;  %v452_v44 = vpack.c.bf16 %v1081_v23, %v1081_v23 }
  0xfc   :  { %v1082_v26 = vld.sshfl [vmem:[#allocation2 + $0xc] sm:$0x33 pattern:$0x76325410]  ;;  %v451_v27 = vpack.c.bf16 %v383_v22, %v383_v22  ;;  %549 = vmatmul.mubr.bf16.vlgmr.msra.gmra.mrb[4].mxu0 %v448_v24  ;;  %v415_v43 = vcombine.high %v1084_v40, %v1084_v40  ;;  %v458_v0 = vpack.c.bf16 %v1084_v40, %v1084_v40 }
  0xfd   :  { %v399_v29 = vcombine.high %v1082_v26, %v1082_v26  ;;  %v453_v31 = vpack.c.bf16 %v391_v25, %v391_v25  ;;  %637 = vmatpush1.bf16.xpose.msra.mxu0 %v1163_v21  ;;  %v454_v48 = vpack.c.bf16 %v1082_v26, %v1082_v26  ;;  %v1085_v54 = vld.sshfl [vmem:[#allocation2 + $0x18] sm:$0x33 pattern:$0x76325410] }
  0xfe   :  { %608 = vmatprep.mubr.bf16.mxu1 %v451_v27  ;;  %638 = vmatprep.subr.bf16.mxu0 %v1171_v32  ;;  %v459_v50 = vpack.c.bf16 %v415_v43, %v415_v43  ;;  %v1086_v56 = vld.sshfl [vmem:[#allocation2 + $0x1c] sm:$0x33 pattern:$0x76325410]  ;;  %v423_v57 = vcombine.high %v1085_v54, %v1085_v54  ;;  %v460_v5 = vpack.c.bf16 %v1085_v54, %v1085_v54 }
  0xff   :  { %v455_v34 = vpack.c.bf16 %v399_v29, %v399_v29  ;;  %668 = vmatprep.mubr.bf16.mxu0 %v453_v31  ;;  %609 = vmatmul.mubr.bf16.vlgmr.msra.gmra.mrb[4].mxu1 %v450_v30  ;;  %v431_v59 = vcombine.high %v1086_v56, %v1086_v56  ;;  %v462_v6 = vpack.c.bf16 %v1086_v56, %v1086_v56 }
 0x100   :  { %697 = vmatpush1.bf16.xpose.msra.mxu1 %v1166_v28  ;;  %v461_v62 = vpack.c.bf16 %v423_v57, %v423_v57 }
 0x101   :  { %728 = vmatprep.mubr.bf16.mxu1 %v455_v34  ;;  %698 = vmatprep.subr.bf16.mxu1 %v1174_v33  ;;  %v463_v2 = vpack.c.bf16 %v431_v59, %v431_v59 }
 0x105   :  { %639 = vmatpush1.bf16.xpose.msra.mxu0 %v1169_v35 }
 0x106   :  { %756 = vmatprep.subr.bf16.mxu0 %v1177_v36 }
 0x108   :  { %699 = vmatpush1.bf16.xpose.msra.mxu1 %v1172_v37 }
 0x109   :  { %816 = vmatprep.subr.bf16.mxu1 %v1180_v39 }
 0x10c   :  { %669 = vmatmul.mubr.bf16.vlgmr.msra.gmra.mrb[8].mxu0 %v452_v44 }
 0x10d   :  { %757 = vmatpush1.bf16.xpose.msra.mxu0 %v1175_v42  ;;  %788 = vmatprep.mubr.bf16.mxu0 %v457_v46 }
 0x10e   :  { %758 = vmatprep.subr.bf16.mxu0 %v1183_v45 }
 0x10f   :  { %729 = vmatmul.mubr.bf16.vlgmr.msra.gmra.mrb[8].mxu1 %v454_v48 }
 0x110   :  { %817 = vmatpush1.bf16.xpose.msra.mxu1 %v1178_v47  ;;  %848 = vmatprep.mubr.bf16.mxu1 %v459_v50 }
 0x111   :  { %818 = vmatprep.subr.bf16.mxu1 %v1186_v49 }
 0x115   :  { %759 = vmatpush1.bf16.xpose.msra.mxu0 %v1181_v51 }
 0x116   :  { %876 = vmatprep.subr.bf16.mxu0 %v1189_v52  ;;  %v1119_v52 = vld [vmem:[%s1442_s4] ss:$0 sm:$0xff] }
 0x118   :  { %819 = vmatpush1.bf16.xpose.msra.mxu1 %v1184_v53 }
 0x119   :  { %936 = vmatprep.subr.bf16.mxu1 %v1192_v55 }
 0x11c   :  { %789 = vmatmul.mubr.bf16.vlgmr.msra.gmra.mrb[12].mxu0 %v456_v60 }
 0x11d   :  { %877 = vmatpush1.bf16.xpose.msra.mxu0 %v1187_v58  ;;  %908 = vmatprep.mubr.bf16.mxu0 %v461_v62 }
 0x11e   :  { %878 = vmatprep.subr.bf16.mxu0 %v1195_v61  ;;  %v1120_v61 = vld [vmem:[%s1443_s6] ss:$0 sm:$0xff] }
 0x11f   :  { %849 = vmatmul.mubr.bf16.vlgmr.msra.gmra.mrb[12].mxu1 %v458_v0 }
 0x120   :  { %937 = vmatpush1.bf16.xpose.msra.mxu1 %v1190_v63  ;;  %968 = vmatprep.mubr.bf16.mxu1 %v463_v2 }
 0x121   :  { %938 = vmatprep.subr.bf16.mxu1 %v1198_v1 }
 0x125   :  { %879 = vmatpush1.bf16.xpose.msra.mxu0 %v1193_v3 }
 0x126   :  { %1124 = vmatprep.subr.bf16.mxu0 %v1201_v8 }
 0x128   :  { %939 = vmatpush1.bf16.xpose.msra.mxu1 %v1196_v4 }
 0x12c   :  { %909 = vmatmul.mubr.bf16.vlgmr.msra.gmra.mrb[16].mxu0 %v460_v5 }
 0x12d   :  { %1125 = vmatpush3.bf16.xpose.msra.mxu0 %v1015_v9  ;;  %1126 = vmatprep.mubr.msk.bf16.mxu0 %vm1202_vm4, %v1201_v8 }
 0x12f   :  { %969 = vmatmul.mubr.bf16.vlgmr.msra.gmra.mrb[16].mxu1 %v462_v6 }
 0x1cf   :  { %v550_v10 = vpop.f32.mrb[4].mxu0 }
 0x1d0   :  { %v552_v11 = vpop.f32.mrb[5].mxu0  ;;  %v977_v14 = vsel %vm976_vm5, %v550_v10, 0.0 }
 0x1d1   :  { %v553_v12 = vpop.f32.mrb[6].mxu0 }
 0x1d2   :  { %v610_v13 = vpop.f32.mrb[4].mxu1  ;;  %v554_v16 = vpop.f32.mrb[7].mxu0 }
 0x1d3   :  { %v978_v15 = vsel %vm976_vm5, %v610_v13, 0.0  ;;  %v612_v17 = vpop.f32.mrb[5].mxu1 }
 0x1d4   :  { %v979_v18 = vadd.f32 %v978_v15, %v977_v14  ;;  %v613_v19 = vpop.f32.mrb[6].mxu1 }
 0x1d5   :  { %v614_v20 = vpop.f32.mrb[7].mxu1 }
 0x1df   :  { %v670_v21 = vpop.f32.mrb[8].mxu0 }
 0x1e0   :  { %v980_v22 = vsel %vm976_vm5, %v670_v21, 0.0  ;;  %v672_v23 = vpop.f32.mrb[9].mxu0 }
 0x1e1   :  { %v981_v24 = vadd.f32 %v980_v22, %v979_v18  ;;  %v673_v25 = vpop.f32.mrb[10].mxu0 }
 0x1e2   :  { %v730_v26 = vpop.f32.mrb[8].mxu1  ;;  %v674_v28 = vpop.f32.mrb[11].mxu0 }
 0x1e3   :  { %v982_v27 = vsel %vm976_vm5, %v730_v26, 0.0  ;;  %v732_v29 = vpop.f32.mrb[9].mxu1 }
 0x1e4   :  { %v983_v30 = vadd.f32 %v982_v27, %v981_v24  ;;  %v733_v31 = vpop.f32.mrb[10].mxu1 }
 0x1e5   :  { %v734_v32 = vpop.f32.mrb[11].mxu1 }
 0x1ef   :  { %v790_v33 = vpop.f32.mrb[12].mxu0 }
 0x1f0   :  { %v984_v34 = vsel %vm976_vm5, %v790_v33, 0.0  ;;  %v792_v35 = vpop.f32.mrb[13].mxu0 }
 0x1f1   :  { %v985_v36 = vadd.f32 %v984_v34, %v983_v30  ;;  %v793_v37 = vpop.f32.mrb[14].mxu0 }
 0x1f2   :  { %v850_v38 = vpop.f32.mrb[12].mxu1  ;;  %v794_v40 = vpop.f32.mrb[15].mxu0 }
 0x1f3   :  { %v986_v39 = vsel %vm976_vm5, %v850_v38, 0.0  ;;  %v852_v41 = vpop.f32.mrb[13].mxu1 }
 0x1f4   :  { %v987_v42 = vadd.f32 %v986_v39, %v985_v36  ;;  %v853_v43 = vpop.f32.mrb[14].mxu1 }
 0x1f5   :  { %v854_v44 = vpop.f32.mrb[15].mxu1 }
 0x1ff   :  { %v910_v45 = vpop.f32.mrb[16].mxu0 }
 0x200   :  { %v988_v46 = vsel %vm976_vm5, %v910_v45, 0.0  ;;  %v912_v47 = vpop.f32.mrb[17].mxu0 }
 0x201   :  { %v989_v48 = vadd.f32 %v988_v46, %v987_v42  ;;  %v913_v49 = vpop.f32.mrb[18].mxu0 }
 0x202   :  { %v970_v50 = vpop.f32.mrb[16].mxu1  ;;  %v914_v53 = vpop.f32.mrb[19].mxu0 }
 0x203   :  { %v990_v51 = vsel %vm976_vm5, %v970_v50, 0.0  ;;  %v972_v54 = vpop.f32.mrb[17].mxu1 }
 0x204   :  { %v991_v55 = vadd.f32 %v990_v51, %v989_v48  ;;  %v973_v56 = vpop.f32.mrb[18].mxu1 }
 0x205   :  { %v974_v57 = vpop.f32.mrb[19].mxu1 }
 0x206   :  { %v999_v58 = vadd.f32 %v1119_v52, %v991_v55 }
 0x208   :  { %v1000_v59 = vmax.f32 %v999_v58, 0.0 }
 0x20a   :  { %v1001_v60 = vpack.c.bf16 %v1000_v59, %v1000_v59 }
 0x20c   :  { %1127 = vmatmul.mubr.msk.bf16.vlgmr.msra.gmra.mrb[20].mxu0 %vm1010_vm3, %v1001_v60 }
 0x2df   :  { %v1051_v62 = vpop.f32.mrb[20].mxu0 }
 0x2e0   :  { %v1052_v63 = vadd.f32 %v1120_v61, %v1051_v62  ;;  %v1128_v0 = vpop.f32.mrb[21].mxu0 }
 0x2e1   :  { %v1054_v1 = vpop.f32.mrb[22].mxu0 }
 0x2e2   :  { %1058 = vst.msk [vmem:[%s1444_s7] sm:$0x3] %vm1057_vm6, %v1052_v63  ;;  %v1129_v2 = vpop.f32.mrb[23].mxu0 }

</bundles_post_ra>
